<compile_context>
chip_gen: v6e
topology: v6e:2x2x1
jax: 0.10.0
libtpu: 0.0.40
codegen_flags: <defaults>
</compile_context>

<pallas_src>
import functools

import jax
import jax.numpy as jnp
from jax import lax
from jax.experimental import pallas as pl
from jax.experimental.pallas import tpu as pltpu

NUM_EMBED = 64
SEQ_LEN = 32                          # max context (tril buffer size in the torch module)
HEADS_NUM = 4
SIZE_HEAD = NUM_EMBED // HEADS_NUM    # 16


# ---------------------------------------------------------------------------
# Fused kernel: QKV projection + causal attention (all batch rows & heads) +
# output projection + bias.  Single grid step; everything stays in VMEM/vregs.
# ---------------------------------------------------------------------------
def _mha_fused_kernel(x_ref, wqkv_ref, wlin_ref, blin_ref, o_ref, *,
                      batch, seq, heads_num, size_head):
    x = x_ref[...]                                   # (B*T, C)
    T = seq
    HS = heads_num * size_head                       # == C

    # One MXU matmul for every head's Q, K, V over all batch rows.
    # Softmax scale C**-0.5 is pre-folded into the Q columns of w_qkv.
    qkv = jnp.dot(x, wqkv_ref[...], preferred_element_type=jnp.float32)  # (B*T, 3*H*S)
    q = qkv[:, 0 * HS:1 * HS]                        # (B*T, H*S), heads side-by-side
    k = qkv[:, 1 * HS:2 * HS]
    v = qkv[:, 2 * HS:3 * HS]

    # Per-(batch, head) attention scores via dot_general (contract last dims:
    # q @ k^T without materializing a transpose).  Static B*H = 8 loop.
    score_tiles = []
    for b in range(batch):
        rows = slice(b * T, (b + 1) * T)
        for h in range(heads_num):
            cols = slice(h * size_head, (h + 1) * size_head)
            s = lax.dot_general(q[rows, cols], k[rows, cols],
                                dimension_numbers=(((1,), (1,)), ((), ())),
                                preferred_element_type=jnp.float32)      # (T, T)
            score_tiles.append(s)

    # Stack all B*H score tiles along sublanes: one masked-softmax pass over
    # (B*H*T, T) instead of B*H tiny (T, T) passes.
    s_all = jnp.concatenate(score_tiles, axis=0)     # (B*H*T, T)
    row = lax.broadcasted_iota(jnp.int32, s_all.shape, 0) % T
    col = lax.broadcasted_iota(jnp.int32, s_all.shape, 1)
    # -1e30 (not -inf) keeps the kernel NaN-safe for fully-masked reuse cases.
    s_all = jnp.where(row >= col, s_all, jnp.float32(-1e30))
    s_all = s_all - jnp.max(s_all, axis=-1, keepdims=True)
    p_all = jnp.exp(s_all)
    # approx reciprocal -> EUP slot (effectively free on the critical VALU path).
    p_all = p_all * pl.reciprocal(jnp.sum(p_all, axis=-1, keepdims=True), approx=True)

    # Per head: p @ v, then project through the matching sublane slice of W_lin^T
    # and accumulate — no head concat, no extra relayout, identical FLOPs.
    y = jnp.zeros((batch * T, HS), jnp.float32)
    for h in range(heads_num):
        cols = slice(h * size_head, (h + 1) * size_head)
        houts = []
        for b in range(batch):
            idx = b * heads_num + h
            p = p_all[idx * T:(idx + 1) * T, :]                          # (T, T)
            vh = v[b * T:(b + 1) * T, cols]                              # (T, S)
            houts.append(jnp.dot(p, vh, preferred_element_type=jnp.float32))
        hcat = jnp.concatenate(houts, axis=0)                            # (B*T, S)
        y = y + jnp.dot(hcat, wlin_ref[cols, :],
                        preferred_element_type=jnp.float32)              # (B*T, C)

    o_ref[...] = (y + blin_ref[...]).astype(o_ref.dtype)


def multihead_attention(x, params, heads_num=HEADS_NUM):
    """Reproduces MultiHeadAttention.forward (dropout = identity / eval mode).

    x: (B, T, C); params["w_qkv"]: (C, 3*H*S) with C**-0.5 folded into Q columns;
    params["w_lin_t"]: (C, C) (already transposed); params["b_lin"]: (1, C).
    Returns (B, T, C).
    """
    B, T, C = x.shape
    w_qkv = params["w_qkv"]
    w_lin_t = params["w_lin_t"]
    b_lin = params["b_lin"]
    F = w_qkv.shape[1]                        # 3 * H * S
    size_head = (F // 3) // heads_num

    x2d = x.reshape(B * T, C)                 # contiguous -> free layout change

    kernel = functools.partial(_mha_fused_kernel, batch=B, seq=T,
                               heads_num=heads_num, size_head=size_head)
    out2d = pl.pallas_call(
        kernel,
        out_shape=jax.ShapeDtypeStruct((B * T, C), jnp.float32),
        grid_spec=pltpu.PrefetchScalarGridSpec(
            num_scalar_prefetch=0,
            grid=(1,),                                   # single step: overhead-bound size
            in_specs=[
                pl.BlockSpec((B * T, C), lambda i: (0, 0)),   # flattened activations
                pl.BlockSpec((C, F), lambda i: (0, 0)),       # stacked (scaled-Q) QKV weight
                pl.BlockSpec((C, C), lambda i: (0, 0)),       # output proj weight^T
                pl.BlockSpec((1, C), lambda i: (0, 0)),       # output proj bias
            ],
            out_specs=pl.BlockSpec((B * T, C), lambda i: (0, 0)),
        ),
        compiler_params=pltpu.CompilerParams(
            dimension_semantics=("arbitrary",)),
    )(x2d, w_qkv, w_lin_t, b_lin)
    return out2d.reshape(B, T, C)


# ---------------------------------------------------------------------------
# Parameter construction / packing
# ---------------------------------------------------------------------------
def _pack_qkv(wq, wk, wv, scale):
    """(H, C, S) per-head weights -> (C, 3*H*S) stacked, heads side-by-side.

    The softmax scale is folded into the Q block (one-time constant fold on
    parameters, not a per-call wrapper op)."""
    H, C, S = wq.shape

    def flat(w):                               # (H, C, S) -> (C, H*S)
        return jnp.transpose(w, (1, 0, 2)).reshape(C, H * S)

    return jnp.concatenate([flat(wq) * scale, flat(wk), flat(wv)], axis=-1)


def init_params(key, heads_num=HEADS_NUM, size_head=SIZE_HEAD,
                num_embed=NUM_EMBED):
    """Deterministic synthetic parameters (shapes match the torch module)."""
    ks = jax.random.split(key, 5)
    # torch Linear weight is (out, in); store transposed (in, out) per head.
    wq = jax.random.normal(ks[0], (heads_num, num_embed, size_head),
                           jnp.float32) * 0.05
    wk = jax.random.normal(ks[1], (heads_num, num_embed, size_head),
                           jnp.float32) * 0.05
    wv = jax.random.normal(ks[2], (heads_num, num_embed, size_head),
                           jnp.float32) * 0.05
    w_lin_t = jax.random.normal(ks[3], (num_embed, num_embed),
                                jnp.float32) * 0.05
    b_lin = jax.random.normal(ks[4], (1, num_embed), jnp.float32) * 0.05
    scale = float(num_embed) ** -0.5           # torch uses num_channels ** -0.5
    return {
        # per-head copies kept only for the pure-JAX reference
        "wq": wq, "wk": wk, "wv": wv,
        # packed weights consumed by the fused kernel (scale folded into Q)
        "w_qkv": _pack_qkv(wq, wk, wv, scale),
        "w_lin_t": w_lin_t, "b_lin": b_lin,
    }


def _reference(x, params):
    """Pure-JAX reference of the torch forward (eval mode)."""
    B, T, C = x.shape
    scale = float(C) ** -0.5
    outs = []
    for h in range(params["wq"].shape[0]):
        q = x @ params["wq"][h]
        k = x @ params["wk"][h]
        v = x @ params["wv"][h]
        s = (q @ jnp.swapaxes(k, -1, -2)) * scale
        mask = jnp.tril(jnp.ones((T, T), bool))
        s = jnp.where(mask, s, -jnp.inf)
        p = jax.nn.softmax(s, axis=-1)
        outs.append(p @ v)
    concat = jnp.concatenate(outs, axis=-1)
    return concat @ params["w_lin_t"] + params["b_lin"][0]


if __name__ == "__main__":
    key = jax.random.PRNGKey(0)
    k_x, k_p = jax.random.split(key)

    B, T = 2, 8                      # T <= SEQ_LEN
    x = jax.random.normal(k_x, (B, T, NUM_EMBED), jnp.float32)
    params = init_params(k_p)

    out = multihead_attention(x, params)
    out = jax.block_until_ready(out)

    ref = _reference(x, params)
    assert out.shape == (B, T, NUM_EMBED), out.shape
    # Tolerance relaxed to 2e-3 for the EUP approx reciprocal in the softmax.
    assert jnp.allclose(out, ref, atol=2e-3, rtol=2e-3), \
        float(jnp.max(jnp.abs(out - ref)))

    print("KERNEL_OK")
</pallas_src>

<mosaic_0001>
module attributes {stable_mosaic.version = 11 : i64} {
  func.func @_mha_fused_kernel(%arg0: i32, %arg1: memref<16x64xf32, #tpu.memory_space<vmem>>, %arg2: memref<64x192xf32, #tpu.memory_space<vmem>>, %arg3: memref<64x64xf32, #tpu.memory_space<vmem>>, %arg4: memref<1x64xf32, #tpu.memory_space<vmem>>, %arg5: memref<16x64xf32, #tpu.memory_space<vmem>>) attributes {dimension_semantics = [#tpu.dimension_semantics<arbitrary>], iteration_bounds = array<i64: 1>, scalar_prefetch = 0 : i64, scratch_operands = 0 : i64, tpu.core_type = #tpu.core_type<tc>, window_params = [{pipeline_mode = #tpu.pipeline_mode<synchronous>, transform_indices = @transform_0, window_bounds = array<i64: 16, 64>}, {pipeline_mode = #tpu.pipeline_mode<synchronous>, transform_indices = @transform_1, window_bounds = array<i64: 64, 192>}, {pipeline_mode = #tpu.pipeline_mode<synchronous>, transform_indices = @transform_2, window_bounds = array<i64: 64, 64>}, {pipeline_mode = #tpu.pipeline_mode<synchronous>, transform_indices = @transform_3, window_bounds = array<i64: 1, 64>}, {pipeline_mode = #tpu.pipeline_mode<synchronous>, transform_indices = @transform_4, window_bounds = array<i64: 16, 64>}]} {
    %c0 = arith.constant 0 : index
    %c0_0 = arith.constant 0 : index
    %0 = vector.load %arg1[%c0, %c0_0] : memref<16x64xf32, #tpu.memory_space<vmem>>, vector<16x64xf32>
    %c0_1 = arith.constant 0 : index
    %c0_2 = arith.constant 0 : index
    %1 = vector.load %arg2[%c0_1, %c0_2] : memref<64x192xf32, #tpu.memory_space<vmem>>, vector<64x192xf32>
    %cst = arith.constant dense<0.000000e+00> : vector<16x192xf32>
    %2 = tpu.matmul %0, %1, %cst {dimension_numbers = #tpu.dot_dimension_numbers<[1], [0], [0], [1], [0, 0, 1, 1], [], []>} : vector<16x64xf32>, vector<64x192xf32>, vector<16x192xf32> -> vector<16x192xf32>
    %3 = vector.extract_strided_slice %2 {offsets = [0, 0], sizes = [16, 64], strides = [1, 1]} : vector<16x192xf32> to vector<16x64xf32>
    %4 = vector.extract_strided_slice %2 {offsets = [0, 64], sizes = [16, 64], strides = [1, 1]} : vector<16x192xf32> to vector<16x64xf32>
    %5 = vector.extract_strided_slice %2 {offsets = [0, 128], sizes = [16, 64], strides = [1, 1]} : vector<16x192xf32> to vector<16x64xf32>
    %6 = vector.extract_strided_slice %3 {offsets = [0, 0], sizes = [8, 16], strides = [1, 1]} : vector<16x64xf32> to vector<8x16xf32>
    %7 = vector.extract_strided_slice %4 {offsets = [0, 0], sizes = [8, 16], strides = [1, 1]} : vector<16x64xf32> to vector<8x16xf32>
    %cst_3 = arith.constant dense<0.000000e+00> : vector<8x8xf32>
    %8 = tpu.matmul %6, %7, %cst_3 {dimension_numbers = #tpu.dot_dimension_numbers<[1], [1], [0], [0], [0, 0, 1, 0], [], []>} : vector<8x16xf32>, vector<8x16xf32>, vector<8x8xf32> -> vector<8x8xf32>
    %9 = vector.extract_strided_slice %3 {offsets = [0, 16], sizes = [8, 16], strides = [1, 1]} : vector<16x64xf32> to vector<8x16xf32>
    %10 = vector.extract_strided_slice %4 {offsets = [0, 16], sizes = [8, 16], strides = [1, 1]} : vector<16x64xf32> to vector<8x16xf32>
    %cst_4 = arith.constant dense<0.000000e+00> : vector<8x8xf32>
    %11 = tpu.matmul %9, %10, %cst_4 {dimension_numbers = #tpu.dot_dimension_numbers<[1], [1], [0], [0], [0, 0, 1, 0], [], []>} : vector<8x16xf32>, vector<8x16xf32>, vector<8x8xf32> -> vector<8x8xf32>
    %12 = vector.extract_strided_slice %3 {offsets = [0, 32], sizes = [8, 16], strides = [1, 1]} : vector<16x64xf32> to vector<8x16xf32>
    %13 = vector.extract_strided_slice %4 {offsets = [0, 32], sizes = [8, 16], strides = [1, 1]} : vector<16x64xf32> to vector<8x16xf32>
    %cst_5 = arith.constant dense<0.000000e+00> : vector<8x8xf32>
    %14 = tpu.matmul %12, %13, %cst_5 {dimension_numbers = #tpu.dot_dimension_numbers<[1], [1], [0], [0], [0, 0, 1, 0], [], []>} : vector<8x16xf32>, vector<8x16xf32>, vector<8x8xf32> -> vector<8x8xf32>
    %15 = vector.extract_strided_slice %3 {offsets = [0, 48], sizes = [8, 16], strides = [1, 1]} : vector<16x64xf32> to vector<8x16xf32>
    %16 = vector.extract_strided_slice %4 {offsets = [0, 48], sizes = [8, 16], strides = [1, 1]} : vector<16x64xf32> to vector<8x16xf32>
    %cst_6 = arith.constant dense<0.000000e+00> : vector<8x8xf32>
    %17 = tpu.matmul %15, %16, %cst_6 {dimension_numbers = #tpu.dot_dimension_numbers<[1], [1], [0], [0], [0, 0, 1, 0], [], []>} : vector<8x16xf32>, vector<8x16xf32>, vector<8x8xf32> -> vector<8x8xf32>
    %18 = vector.extract_strided_slice %3 {offsets = [8, 0], sizes = [8, 16], strides = [1, 1]} : vector<16x64xf32> to vector<8x16xf32>
    %19 = vector.extract_strided_slice %4 {offsets = [8, 0], sizes = [8, 16], strides = [1, 1]} : vector<16x64xf32> to vector<8x16xf32>
    %cst_7 = arith.constant dense<0.000000e+00> : vector<8x8xf32>
    %20 = tpu.matmul %18, %19, %cst_7 {dimension_numbers = #tpu.dot_dimension_numbers<[1], [1], [0], [0], [0, 0, 1, 0], [], []>} : vector<8x16xf32>, vector<8x16xf32>, vector<8x8xf32> -> vector<8x8xf32>
    %21 = vector.extract_strided_slice %3 {offsets = [8, 16], sizes = [8, 16], strides = [1, 1]} : vector<16x64xf32> to vector<8x16xf32>
    %22 = vector.extract_strided_slice %4 {offsets = [8, 16], sizes = [8, 16], strides = [1, 1]} : vector<16x64xf32> to vector<8x16xf32>
    %cst_8 = arith.constant dense<0.000000e+00> : vector<8x8xf32>
    %23 = tpu.matmul %21, %22, %cst_8 {dimension_numbers = #tpu.dot_dimension_numbers<[1], [1], [0], [0], [0, 0, 1, 0], [], []>} : vector<8x16xf32>, vector<8x16xf32>, vector<8x8xf32> -> vector<8x8xf32>
    %24 = vector.extract_strided_slice %3 {offsets = [8, 32], sizes = [8, 16], strides = [1, 1]} : vector<16x64xf32> to vector<8x16xf32>
    %25 = vector.extract_strided_slice %4 {offsets = [8, 32], sizes = [8, 16], strides = [1, 1]} : vector<16x64xf32> to vector<8x16xf32>
    %cst_9 = arith.constant dense<0.000000e+00> : vector<8x8xf32>
    %26 = tpu.matmul %24, %25, %cst_9 {dimension_numbers = #tpu.dot_dimension_numbers<[1], [1], [0], [0], [0, 0, 1, 0], [], []>} : vector<8x16xf32>, vector<8x16xf32>, vector<8x8xf32> -> vector<8x8xf32>
    %27 = vector.extract_strided_slice %3 {offsets = [8, 48], sizes = [8, 16], strides = [1, 1]} : vector<16x64xf32> to vector<8x16xf32>
    %28 = vector.extract_strided_slice %4 {offsets = [8, 48], sizes = [8, 16], strides = [1, 1]} : vector<16x64xf32> to vector<8x16xf32>
    %cst_10 = arith.constant dense<0.000000e+00> : vector<8x8xf32>
    %29 = tpu.matmul %27, %28, %cst_10 {dimension_numbers = #tpu.dot_dimension_numbers<[1], [1], [0], [0], [0, 0, 1, 0], [], []>} : vector<8x16xf32>, vector<8x16xf32>, vector<8x8xf32> -> vector<8x8xf32>
    %30 = tpu.concatenate %8, %11, %14, %17, %20, %23, %26, %29 in 0 : vector<8x8xf32>, vector<8x8xf32>, vector<8x8xf32>, vector<8x8xf32>, vector<8x8xf32>, vector<8x8xf32>, vector<8x8xf32>, vector<8x8xf32> -> vector<64x8xf32>
    %31 = tpu.iota {dimensions = array<i32: 0>} : vector<64x8xi32>
    %c8_i32 = arith.constant 8 : i32
    %c0_i32 = arith.constant 0 : i32
    %32 = arith.cmpi eq, %c8_i32, %c0_i32 : i32
    %c1_i32 = arith.constant 1 : i32
    %33 = arith.select %32, %c1_i32, %c8_i32 : i32
    %34 = vector.broadcast %33 : i32 to vector<64x8xi32>
    %35 = arith.remsi %31, %34 : vector<64x8xi32>
    %c0_i32_11 = arith.constant 0 : i32
    %36 = vector.broadcast %c0_i32_11 : i32 to vector<64x8xi32>
    %37 = arith.cmpi ne, %35, %36 : vector<64x8xi32>
    %c0_i32_12 = arith.constant 0 : i32
    %38 = vector.broadcast %c0_i32_12 : i32 to vector<64x8xi32>
    %39 = arith.cmpi slt, %35, %38 : vector<64x8xi32>
    %c0_i32_13 = arith.constant 0 : i32
    %40 = arith.cmpi slt, %33, %c0_i32_13 : i32
    %41 = vector.broadcast %40 : i1 to vector<64x8xi1>
    %42 = vector.broadcast %41 : vector<64x8xi1> to vector<64x8xi1>
    %43 = arith.xori %39, %42 : vector<64x8xi1>
    %44 = arith.andi %43, %37 : vector<64x8xi1>
    %45 = vector.broadcast %33 : i32 to vector<64x8xi32>
    %46 = arith.addi %35, %45 : vector<64x8xi32>
    %47 = arith.select %44, %46, %35 : vector<64x8xi1>, vector<64x8xi32>
    %48 = tpu.iota {dimensions = array<i32: 1>} : vector<64x8xi32>
    %49 = arith.cmpi sge, %47, %48 : vector<64x8xi32>
    %cst_14 = arith.constant -1.000000e+30 : f32
    %50 = vector.broadcast %cst_14 : f32 to vector<64x8xf32>
    %51 = arith.select %49, %30, %50 : vector<64x8xi1>, vector<64x8xf32>
    %cst_15 = arith.constant dense<0xFF800000> : vector<64xf32>
    %52 = vector.multi_reduction <maximumf>, %51, %cst_15 [1] : vector<64x8xf32> to vector<64xf32>
    %53 = vector.shape_cast %52 : vector<64xf32> to vector<64x1xf32>
    %54 = vector.broadcast %53 : vector<64x1xf32> to vector<64x8xf32>
    %55 = arith.subf %51, %54 : vector<64x8xf32>
    %56 = math.exp %55 : vector<64x8xf32>
    %cst_16 = arith.constant dense<0.000000e+00> : vector<64xf32>
    %57 = vector.multi_reduction <add>, %56, %cst_16 [1] : vector<64x8xf32> to vector<64xf32>
    %58 = vector.shape_cast %57 : vector<64xf32> to vector<64x1xf32>
    %59 = tpu.reciprocal %58 {approx = true} : vector<64x1xf32> -> vector<64x1xf32>
    %60 = vector.broadcast %59 : vector<64x1xf32> to vector<64x8xf32>
    %61 = arith.mulf %56, %60 : vector<64x8xf32>
    %cst_17 = arith.constant 0.000000e+00 : f32
    %62 = vector.broadcast %cst_17 : f32 to vector<16x64xf32>
    %63 = vector.extract_strided_slice %61 {offsets = [0, 0], sizes = [8, 8], strides = [1, 1]} : vector<64x8xf32> to vector<8x8xf32>
    %64 = vector.extract_strided_slice %5 {offsets = [0, 0], sizes = [8, 16], strides = [1, 1]} : vector<16x64xf32> to vector<8x16xf32>
    %cst_18 = arith.constant dense<0.000000e+00> : vector<8x16xf32>
    %65 = tpu.matmul %63, %64, %cst_18 {dimension_numbers = #tpu.dot_dimension_numbers<[1], [0], [0], [1], [0, 0, 1, 1], [], []>} : vector<8x8xf32>, vector<8x16xf32>, vector<8x16xf32> -> vector<8x16xf32>
    %66 = vector.extract_strided_slice %61 {offsets = [32, 0], sizes = [8, 8], strides = [1, 1]} : vector<64x8xf32> to vector<8x8xf32>
    %67 = vector.extract_strided_slice %5 {offsets = [8, 0], sizes = [8, 16], strides = [1, 1]} : vector<16x64xf32> to vector<8x16xf32>
    %cst_19 = arith.constant dense<0.000000e+00> : vector<8x16xf32>
    %68 = tpu.matmul %66, %67, %cst_19 {dimension_numbers = #tpu.dot_dimension_numbers<[1], [0], [0], [1], [0, 0, 1, 1], [], []>} : vector<8x8xf32>, vector<8x16xf32>, vector<8x16xf32> -> vector<8x16xf32>
    %69 = tpu.concatenate %65, %68 in 0 : vector<8x16xf32>, vector<8x16xf32> -> vector<16x16xf32>
    %c0_20 = arith.constant 0 : index
    %c0_21 = arith.constant 0 : index
    %70 = vector.load %arg3[%c0_20, %c0_21] : memref<64x64xf32, #tpu.memory_space<vmem>>, vector<16x64xf32>
    %cst_22 = arith.constant dense<0.000000e+00> : vector<16x64xf32>
    %71 = tpu.matmul %69, %70, %cst_22 {dimension_numbers = #tpu.dot_dimension_numbers<[1], [0], [0], [1], [0, 0, 1, 1], [], []>} : vector<16x16xf32>, vector<16x64xf32>, vector<16x64xf32> -> vector<16x64xf32>
    %72 = arith.addf %62, %71 : vector<16x64xf32>
    %73 = vector.extract_strided_slice %61 {offsets = [8, 0], sizes = [8, 8], strides = [1, 1]} : vector<64x8xf32> to vector<8x8xf32>
    %74 = vector.extract_strided_slice %5 {offsets = [0, 16], sizes = [8, 16], strides = [1, 1]} : vector<16x64xf32> to vector<8x16xf32>
    %cst_23 = arith.constant dense<0.000000e+00> : vector<8x16xf32>
    %75 = tpu.matmul %73, %74, %cst_23 {dimension_numbers = #tpu.dot_dimension_numbers<[1], [0], [0], [1], [0, 0, 1, 1], [], []>} : vector<8x8xf32>, vector<8x16xf32>, vector<8x16xf32> -> vector<8x16xf32>
    %76 = vector.extract_strided_slice %61 {offsets = [40, 0], sizes = [8, 8], strides = [1, 1]} : vector<64x8xf32> to vector<8x8xf32>
    %77 = vector.extract_strided_slice %5 {offsets = [8, 16], sizes = [8, 16], strides = [1, 1]} : vector<16x64xf32> to vector<8x16xf32>
    %cst_24 = arith.constant dense<0.000000e+00> : vector<8x16xf32>
    %78 = tpu.matmul %76, %77, %cst_24 {dimension_numbers = #tpu.dot_dimension_numbers<[1], [0], [0], [1], [0, 0, 1, 1], [], []>} : vector<8x8xf32>, vector<8x16xf32>, vector<8x16xf32> -> vector<8x16xf32>
    %79 = tpu.concatenate %75, %78 in 0 : vector<8x16xf32>, vector<8x16xf32> -> vector<16x16xf32>
    %c16 = arith.constant 16 : index
    %c0_25 = arith.constant 0 : index
    %80 = vector.load %arg3[%c16, %c0_25] : memref<64x64xf32, #tpu.memory_space<vmem>>, vector<16x64xf32>
    %cst_26 = arith.constant dense<0.000000e+00> : vector<16x64xf32>
    %81 = tpu.matmul %79, %80, %cst_26 {dimension_numbers = #tpu.dot_dimension_numbers<[1], [0], [0], [1], [0, 0, 1, 1], [], []>} : vector<16x16xf32>, vector<16x64xf32>, vector<16x64xf32> -> vector<16x64xf32>
    %82 = arith.addf %72, %81 : vector<16x64xf32>
    %83 = vector.extract_strided_slice %61 {offsets = [16, 0], sizes = [8, 8], strides = [1, 1]} : vector<64x8xf32> to vector<8x8xf32>
    %84 = vector.extract_strided_slice %5 {offsets = [0, 32], sizes = [8, 16], strides = [1, 1]} : vector<16x64xf32> to vector<8x16xf32>
    %cst_27 = arith.constant dense<0.000000e+00> : vector<8x16xf32>
    %85 = tpu.matmul %83, %84, %cst_27 {dimension_numbers = #tpu.dot_dimension_numbers<[1], [0], [0], [1], [0, 0, 1, 1], [], []>} : vector<8x8xf32>, vector<8x16xf32>, vector<8x16xf32> -> vector<8x16xf32>
    %86 = vector.extract_strided_slice %61 {offsets = [48, 0], sizes = [8, 8], strides = [1, 1]} : vector<64x8xf32> to vector<8x8xf32>
    %87 = vector.extract_strided_slice %5 {offsets = [8, 32], sizes = [8, 16], strides = [1, 1]} : vector<16x64xf32> to vector<8x16xf32>
    %cst_28 = arith.constant dense<0.000000e+00> : vector<8x16xf32>
    %88 = tpu.matmul %86, %87, %cst_28 {dimension_numbers = #tpu.dot_dimension_numbers<[1], [0], [0], [1], [0, 0, 1, 1], [], []>} : vector<8x8xf32>, vector<8x16xf32>, vector<8x16xf32> -> vector<8x16xf32>
    %89 = tpu.concatenate %85, %88 in 0 : vector<8x16xf32>, vector<8x16xf32> -> vector<16x16xf32>
    %c32 = arith.constant 32 : index
    %c0_29 = arith.constant 0 : index
    %90 = vector.load %arg3[%c32, %c0_29] : memref<64x64xf32, #tpu.memory_space<vmem>>, vector<16x64xf32>
    %cst_30 = arith.constant dense<0.000000e+00> : vector<16x64xf32>
    %91 = tpu.matmul %89, %90, %cst_30 {dimension_numbers = #tpu.dot_dimension_numbers<[1], [0], [0], [1], [0, 0, 1, 1], [], []>} : vector<16x16xf32>, vector<16x64xf32>, vector<16x64xf32> -> vector<16x64xf32>
    %92 = arith.addf %82, %91 : vector<16x64xf32>
    %93 = vector.extract_strided_slice %61 {offsets = [24, 0], sizes = [8, 8], strides = [1, 1]} : vector<64x8xf32> to vector<8x8xf32>
    %94 = vector.extract_strided_slice %5 {offsets = [0, 48], sizes = [8, 16], strides = [1, 1]} : vector<16x64xf32> to vector<8x16xf32>
    %cst_31 = arith.constant dense<0.000000e+00> : vector<8x16xf32>
    %95 = tpu.matmul %93, %94, %cst_31 {dimension_numbers = #tpu.dot_dimension_numbers<[1], [0], [0], [1], [0, 0, 1, 1], [], []>} : vector<8x8xf32>, vector<8x16xf32>, vector<8x16xf32> -> vector<8x16xf32>
    %96 = vector.extract_strided_slice %61 {offsets = [56, 0], sizes = [8, 8], strides = [1, 1]} : vector<64x8xf32> to vector<8x8xf32>
    %97 = vector.extract_strided_slice %5 {offsets = [8, 48], sizes = [8, 16], strides = [1, 1]} : vector<16x64xf32> to vector<8x16xf32>
    %cst_32 = arith.constant dense<0.000000e+00> : vector<8x16xf32>
    %98 = tpu.matmul %96, %97, %cst_32 {dimension_numbers = #tpu.dot_dimension_numbers<[1], [0], [0], [1], [0, 0, 1, 1], [], []>} : vector<8x8xf32>, vector<8x16xf32>, vector<8x16xf32> -> vector<8x16xf32>
    %99 = tpu.concatenate %95, %98 in 0 : vector<8x16xf32>, vector<8x16xf32> -> vector<16x16xf32>
    %c48 = arith.constant 48 : index
    %c0_33 = arith.constant 0 : index
    %100 = vector.load %arg3[%c48, %c0_33] : memref<64x64xf32, #tpu.memory_space<vmem>>, vector<16x64xf32>
    %cst_34 = arith.constant dense<0.000000e+00> : vector<16x64xf32>
    %101 = tpu.matmul %99, %100, %cst_34 {dimension_numbers = #tpu.dot_dimension_numbers<[1], [0], [0], [1], [0, 0, 1, 1], [], []>} : vector<16x16xf32>, vector<16x64xf32>, vector<16x64xf32> -> vector<16x64xf32>
    %102 = arith.addf %92, %101 : vector<16x64xf32>
    %c0_35 = arith.constant 0 : index
    %c0_36 = arith.constant 0 : index
    %103 = vector.load %arg4[%c0_35, %c0_36] : memref<1x64xf32, #tpu.memory_space<vmem>>, vector<1x64xf32>
    %104 = vector.broadcast %103 : vector<1x64xf32> to vector<16x64xf32>
    %105 = arith.addf %102, %104 : vector<16x64xf32>
    %c0_37 = arith.constant 0 : index
    %c0_38 = arith.constant 0 : index
    %106 = vector.load %arg5[%c0_37, %c0_38] : memref<16x64xf32, #tpu.memory_space<vmem>>, vector<16x64xf32>
    tpu.vector_store %arg5[%c0_37, %c0_38], %105 {strides = array<i32>} : memref<16x64xf32, #tpu.memory_space<vmem>>, vector<16x64xf32>,
    return
  }
  func.func @transform_0(%arg0: i32) -> (i32, i32) {
    %c0_i32 = arith.constant 0 : i32
    %c0_i32_0 = arith.constant 0 : i32
    %c0_i32_1 = arith.constant 0 : i32
    return %c0_i32, %c0_i32_0 : i32, i32
  }
  func.func @transform_1(%arg0: i32) -> (i32, i32) {
    %c0_i32 = arith.constant 0 : i32
    %c0_i32_0 = arith.constant 0 : i32
    %c0_i32_1 = arith.constant 0 : i32
    return %c0_i32, %c0_i32_0 : i32, i32
  }
  func.func @transform_2(%arg0: i32) -> (i32, i32) {
    %c0_i32 = arith.constant 0 : i32
    %c0_i32_0 = arith.constant 0 : i32
    %c0_i32_1 = arith.constant 0 : i32
    return %c0_i32, %c0_i32_0 : i32, i32
  }
  func.func @transform_3(%arg0: i32) -> (i32, i32) {
    %c0_i32 = arith.constant 0 : i32
    %c0_i32_0 = arith.constant 0 : i32
    %c0_i32_1 = arith.constant 0 : i32
    return %c0_i32, %c0_i32_0 : i32, i32
  }
  func.func @transform_4(%arg0: i32) -> (i32, i32) {
    %c0_i32 = arith.constant 0 : i32
    %c0_i32_0 = arith.constant 0 : i32
    %c0_i32_1 = arith.constant 0 : i32
    return %c0_i32, %c0_i32_0 : i32, i32
  }
}

</mosaic_0001>

<bundles_post_ra>
// kernel: tpu_custom_call.1
= control target key start
LH: loop header
LB: loop body
LE: loop exit
PB: predicated region body
PF: predicated region fallthrough
CT: control target
= control target key end

     0   :  { %9 = vsyncpa [#allocation3], 0  ;;  %s2524_s0 = inlined_call_operand.hbm [shape: f32[16,64], index: 0, kind: input, shape index: {}]   ;;  %s2525_s1 = inlined_call_operand.hbm [shape: f32[64,192], index: 1, kind: input, shape index: {}]   ;;  %s2526_s2 = inlined_call_operand.hbm [shape: f32[64,64], index: 2, kind: input, shape index: {}]   ;;  %s2527_s3 = inlined_call_operand.vmem [shape: f32[1,64], index: 3, kind: input, shape index: {}]   ;;  %s2528_s4 = inlined_call_operand.hbm [shape: f32[16,64], index: 4, kind: output, shape index: {}]  }
   0x1   :  { %10 = vsyncpa [#allocation6], 0 }
   0x2   :  { %11 = vsyncpa [#allocation4], 0  ;;  %s2290_s15 = smov [#allocation5]  }
   0x3   :  { %s29_s16 = sshll.u32 %s2290_s15, 4  ;;  %s30_s16 = int_to_ptr.vmem [resolvable:$true] %s29_s16 }
   0x4   :  { %s2212_s17 = scalar_lea.vmem %s30_s16, 2048  ;;  %p2217_p1 = scmp.lt.s32.totalorder %s30_s16, %s30_s16 }
   0x5   :  { %p2213_p0 = scmp.ne.s32.totalorder %s30_s16, %s2212_s17  ;;  %p2218_p2 = scmp.lt.s32.totalorder %s2212_s17, %s2212_s17 }
   0x7   :  { %p2219_p3 = por %p2218_p2, %p2217_p1 }
   0x9   :  { %p2220_p4 = pnand %p2219_p3, %p2213_p0 }
   0xb   :  { %2223 = shalt.err (!%p2220_p4)
}
   0xc   :  { %s2291_s18 = smov 256   ;;  %s2292_s19 = smov 16  }
   0xd   :  { %35 = dma.hbm_to_vmem [thread:$0]  %s2525_s1, 2048, %s30_s16, [#allocation6], %s2291_s18, %s2291_s18, %s2292_s19  }
   0xe   :  { %s2293_s22 = smov [#allocation2]  }
   0xf   :  { %s17_s23 = sshll.u32 %s2293_s22, 4  ;;  %s18_s23 = int_to_ptr.vmem [resolvable:$true] %s17_s23 }
  0x10   :  { %s2232_s24 = scalar_lea.vmem %s18_s23, 256  ;;  %p2237_p6 = scmp.lt.s32.totalorder %s18_s23, %s18_s23 }
  0x11   :  { %p2233_p5 = scmp.ne.s32.totalorder %s18_s23, %s2232_s24  ;;  %p2238_p7 = scmp.lt.s32.totalorder %s2232_s24, %s2232_s24 }
  0x13   :  { %p2239_p8 = por %p2238_p7, %p2237_p6 }
  0x15   :  { %p2240_p9 = pnand %p2239_p8, %p2233_p5 }
  0x17   :  { %2243 = shalt.err (!%p2240_p9)
}
  0x18   :  { %s2294_s25 = smov 128   ;;  %s2295_s26 = smov 8  }
  0x19   :  { %23 = dma.hbm_to_vmem [thread:$0]  %s2524_s0, 256, %s18_s23, [#allocation3], %s2294_s25, %s2294_s25, %s2295_s26  }
  0x1a   :  { %s2296_s1 = smov [#allocation7]  }
  0x1b   :  { %s41_s29 = sshll.u32 %s2296_s1, 4  ;;  %s42_s29 = int_to_ptr.vmem [resolvable:$true] %s41_s29 }
  0x1c   :  { %s2252_s30 = scalar_lea.vmem %s42_s29, 1024  ;;  %p2257_p11 = scmp.lt.s32.totalorder %s42_s29, %s42_s29 }
  0x1d   :  { %p2253_p10 = scmp.ne.s32.totalorder %s42_s29, %s2252_s30  ;;  %p2258_p12 = scmp.lt.s32.totalorder %s2252_s30, %s2252_s30 }
  0x1f   :  { %p2259_p13 = por %p2258_p12, %p2257_p11 }
  0x21   :  { %p2260_p0 = pnand %p2259_p13, %p2253_p10 }
  0x23   :  { %2263 = shalt.err (!%p2260_p0)
}
  0x24   :  { %47 = dma.hbm_to_vmem [thread:$0]  %s2526_s2, 1024, %s42_s29, [#allocation6], %s2294_s25, %s2294_s25, %s2295_s26  }
  0x25   :  { %2284 = dma.done.wait [#allocation3], 256  }
  0x26   :  { %2285 = vsyncadd [#allocation3], 4294967040 }
  0x27   :  { %2286 = dma.done.wait [#allocation6], 3072  }
  0x28   :  { %2287 = vsyncadd [#allocation6], 4294964224  ;;  %v2297_v0 = vmov 0.0   ;;  %v76_v1 = vld [vmem:[#allocation5 + $0x78] sm:$0xff]  ;;  %v75_v2 = vld [vmem:[#allocation5 + $0x70] sm:$0xff]  ;;  %vm77_vm0 = vcmask 523264   ;;  %v784_v34 = vlaneseq }
  0x29   :  { %148 = vmatprep.mubr.f32.mxu0 %v2297_v0  ;;  %2048 = vmatprep.subr.mxu1 %v2297_v0  ;;  %v74_v3 = vld [vmem:[#allocation5 + $0x68] sm:$0xff]  ;;  %v73_v4 = vld [vmem:[#allocation5 + $0x60] sm:$0xff]  ;;  %v72_v5 = vld [vmem:[#allocation5 + $0x58] sm:$0xff]  ;;  %vm2298_vm1 = vmmov 0   ;;  %s2299_s0 = smov 112   ;;  %s2300_s2 = smov 64  }
  0x2a   :  { %100 = vmatprep.subr.mxu0 %v76_v1  ;;  %v71_v6 = vld [vmem:[#allocation5 + $0x50] sm:$0xff]  ;;  %v70_v7 = vld [vmem:[#allocation5 + $0x48] sm:$0xff]  ;;  %v69_v8 = vld [vmem:[#allocation5 + $0x40] sm:$0xff]  ;;  %2050 = vmatprep.mubr.msk.f32.mxu1 %vm2298_vm1, %v2297_v0  ;;  %s2301_s7 = smov 32   ;;  %s2302_s8 = smov 48   ;;  %vm164_vm2 = vcmask 130048  }
  0x2b   :  { %101 = vmatpush1.msra.mxu0 %v75_v2  ;;  %v68_v9 = vld [vmem:[#allocation5 + $0x38] sm:$0xff]  ;;  %v67_v10 = vld [vmem:[#allocation5 + $0x30] sm:$0xff]  ;;  %v66_v11 = vld [vmem:[#allocation5 + $0x28] sm:$0xff]  ;;  %s2303_s9 = smov 96   ;;  %s2304_s10 = smov 80   ;;  %v2410_v35 = vshrl.u32 %v784_v34, 7 }
  0x2c   :  { %102 = vmatprep.subr.mxu0 %v74_v3  ;;  %v65_v12 = vld [vmem:[#allocation5 + $0x20] sm:$0xff]  ;;  %v64_v13 = vld [vmem:[#allocation5 + $0x18] sm:$0xff]  ;;  %v63_v14 = vld [vmem:[#allocation5 + $0x10] sm:$0xff]  ;;  %v2413_v37 = vand.u32 127, %v784_v34  ;;  %vm907_vm4 = vcmask 64512   ;;  %s2305_s13 = smov [#allocation8]  }
  0x2d   :  { %103 = vmatpush1.msra.mxu0 %v73_v4  ;;  %v62_v15 = vld [vmem:[#allocation5 + $0x8] sm:$0xff]  ;;  %v61_v16 = vld [vmem:[#allocation5] sm:$0xff]  ;;  %v59_v17 = vld [vmem:[#allocation2] sm:$0xff]  ;;  %v797_v36 = vand.u32 7, %v2410_v35  ;;  %v786_v38 = vadd.s32 8, %v2410_v35  ;;  %v789_v48 = vadd.s32 32, %v2410_v35 }
  0x2e   :  { %104 = vmatprep.subr.mxu0 %v72_v5  ;;  %v60_v18 = vld [vmem:[#allocation2 + $0x8] sm:$0xff]  ;;  %v790_v49 = vadd.s32 40, %v2410_v35  ;;  %s1952_s14 = sshll.u32 %s2305_s13, 4  ;;  %s1953_s14 = int_to_ptr.vmem [resolvable:$true] %s1952_s14 }
  0x2f   :  { %105 = vmatpush1.msra.mxu0 %v71_v6  ;;  %vm891_vm3 = vcmp.ge.s32.totalorder %v797_v36, %v2413_v37  ;;  %v804_v39 = vand.u32 7, %v786_v38  ;;  %v825_v52 = vand.u32 7, %v789_v48  ;;  %s2264_s15 = scalar_lea.vmem %s1953_s14, 256  ;;  %p2269_p2 = scmp.lt.s32.totalorder %s1953_s14, %s1953_s14 }
  0x30   :  { %106 = vmatprep.subr.mxu0 %v70_v7  ;;  %v832_v53 = vand.u32 7, %v790_v49  ;;  %p2265_p1 = scmp.ne.s32.totalorder %s1953_s14, %s2264_s15  ;;  %p2270_p3 = scmp.lt.s32.totalorder %s2264_s15, %s2264_s15 }
  0x31   :  { %107 = vmatpush1.msra.mxu0 %v69_v8  ;;  %vm892_vm5 = vcmp.ge.s32.totalorder %v804_v39, %v2413_v37  ;;  %vm895_vm6 = vcmp.ge.s32.totalorder %v825_v52, %v2413_v37 }
  0x32   :  { %108 = vmatprep.subr.mxu0 %v68_v9  ;;  %vm896_vm7 = vcmp.ge.s32.totalorder %v832_v53, %v2413_v37  ;;  %p2271_p4 = por %p2270_p3, %p2269_p2 }
  0x33   :  { %109 = vmatpush1.msra.mxu0 %v67_v10 }
  0x34   :  { %110 = vmatprep.subr.mxu0 %v66_v11  ;;  %p2272_p5 = pnand %p2271_p4, %p2265_p1 }
  0x35   :  { %111 = vmatpush1.msra.mxu0 %v65_v12 }
  0x36   :  { %112 = vmatprep.subr.mxu0 %v64_v13 }
  0x37   :  { %113 = vmatpush1.msra.mxu0 %v63_v14 }
  0x38   :  { %114 = vmatprep.subr.mxu0 %v62_v15 }
  0x39   :  { %115 = vmatpush1.msra.mxu0 %v61_v16 }
  0x3a   :  { %1965 = vmatmul.mubr.msk.f32.vlgmr.msra.gmra.mxu0 %vm77_vm0, %v59_v17  ;;  %2073 = vmatprep.subr.mxu0 %v2297_v0 }
  0x3b   :  { %154 = vmatprep.mubr.f32.mxu0 %v2297_v0 }
  0x3e   :  { %1966 = vmatmul.mubr.msk.f32.gmra.mxu0 %vm77_vm0, %v60_v18 }
  0x3f   :  { %2075 = vmatprep.mubr.msk.f32.mxu0 %vm2298_vm1, %v2297_v0 }
  0xfa   :  { %v150_v19 = vpop.f32.mrf.mxu0 }
  0xfb   :  { %239 = vrot.lane.b32.xlu1 %v150_v19, %s2299_s0  ;;  %162 = vrot.lane.b32.xlu0 %v150_v19, %s2300_s2 }
  0xfc   :  { %v2358_v20 = vpop.f32.mrf.mxu0 }
  0xfe   :  { %v2362_v21 = vpop.f32.mrf.mxu0 }
  0xff   :  { %319 = vrot.lane.b32.xlu1 %v150_v19, %s2301_s7  ;;  %241 = vrot.lane.b32.xlu0 %v150_v19, %s2302_s8 }
 0x100   :  { %v2426_v55 = vpop.f32.mrf.mxu0 }
 0x103   :  { %397 = vrot.lane.b32.xlu1 %v150_v19, %s2292_s19  ;;  %317 = vrot.lane.b32.xlu0 %v150_v19, %s2303_s9 }
 0x107   :  { %395 = vrot.lane.b32.xlu0 %v150_v19, %s2304_s10  ;;  %474 = vrot.lane.b32.xlu1 %v2362_v21, %s2300_s2 }
 0x10b   :  { %552 = vrot.lane.b32.xlu0 %v2362_v21, %s2302_s8  ;;  %550 = vrot.lane.b32.xlu1 %v2362_v21, %s2299_s0 }
 0x10f   :  { %630 = vrot.lane.b32.xlu0 %v2362_v21, %s2301_s7  ;;  %628 = vrot.lane.b32.xlu1 %v2362_v21, %s2303_s9 }
 0x16d   :  { %v240_v22 = vpop.permute.xlu1 %239  ;;  %v163_v23 = vpop.permute.xlu0 %162 }
 0x16e   :  { %2049 = vmatpush3.xpose.msk.msra.mxu1 %vm164_vm2, %v163_v23 }
 0x16f   :  { %2053 = vmatprep.subr.mxu1 %v2297_v0 }
 0x171   :  { %v320_v24 = vpop.permute.xlu1 %319  ;;  %2051 = vmatmul.mubr.msk.f32.vlgmr.msra.gmra.mxu1 %vm164_vm2, %v150_v19  ;;  %v242_v25 = vpop.permute.xlu0 %241 }
 0x172   :  { %2054 = vmatpush3.xpose.msk.msra.mxu1 %vm164_vm2, %v242_v25  ;;  %2055 = vmatprep.mubr.msk.f32.mxu1 %vm2298_vm1, %v2297_v0 }
 0x173   :  { %2058 = vmatprep.subr.mxu1 %v2297_v0 }
 0x175   :  { %v398_v26 = vpop.permute.xlu1 %397  ;;  %2056 = vmatmul.mubr.msk.f32.vlgmr.msra.gmra.mxu1 %vm164_vm2, %v240_v22  ;;  %v318_v27 = vpop.permute.xlu0 %317 }
 0x176   :  { %2059 = vmatpush3.xpose.msk.msra.mxu1 %vm164_vm2, %v320_v24  ;;  %2060 = vmatprep.mubr.msk.f32.mxu1 %vm2298_vm1, %v2297_v0 }
 0x177   :  { %2063 = vmatprep.subr.mxu1 %v2297_v0 }
 0x179   :  { %2061 = vmatmul.mubr.msk.f32.vlgmr.msra.gmra.mxu1 %vm164_vm2, %v318_v27  ;;  %v396_v28 = vpop.permute.xlu0 %395  ;;  %v475_v29 = vpop.permute.xlu1 %474  ;;  %v791_v27 = vadd.s32 48, %v2410_v35 }
 0x17a   :  { %2064 = vmatpush3.xpose.msk.msra.mxu1 %vm164_vm2, %v398_v26  ;;  %2065 = vmatprep.mubr.msk.f32.mxu1 %vm2298_vm1, %v2297_v0 }
 0x17b   :  { %2068 = vmatprep.subr.mxu1 %v2297_v0 }
 0x17d   :  { %2066 = vmatmul.mubr.msk.f32.vlgmr.msra.gmra.mxu1 %vm164_vm2, %v396_v28  ;;  %v553_v30 = vpop.permute.xlu0 %552  ;;  %v551_v31 = vpop.permute.xlu1 %550  ;;  %v839_v28 = vand.u32 7, %v791_v27 }
 0x17e   :  { %2069 = vmatpush3.xpose.msk.msra.mxu1 %vm164_vm2, %v475_v29  ;;  %2074 = vmatpush3.xpose.msk.msra.mxu0 %vm164_vm2, %v553_v30  ;;  %v787_v30 = vadd.s32 16, %v2410_v35 }
 0x17f   :  { %2070 = vmatprep.mubr.msk.f32.mxu1 %vm2298_vm1, %v2297_v0  ;;  %2078 = vmatprep.subr.mxu1 %v2297_v0  ;;  %vm897_vm8 = vcmp.ge.s32.totalorder %v839_v28, %v2413_v37 }
 0x180   :  { %2083 = vmatprep.subr.mxu0 %v2297_v0 }
 0x181   :  { %v631_v32 = vpop.permute.xlu0 %630  ;;  %2071 = vmatmul.mubr.msk.f32.vlgmr.msra.gmra.mxu1 %vm164_vm2, %v2362_v21  ;;  %2076 = vmatmul.mubr.msk.f32.vlgmr.msra.gmra.mxu0 %vm164_vm2, %v551_v31  ;;  %v629_v33 = vpop.permute.xlu1 %628 }
 0x182   :  { %2079 = vmatpush3.xpose.msk.msra.mxu1 %vm164_vm2, %v631_v32  ;;  %2080 = vmatprep.mubr.msk.f32.mxu1 %vm2298_vm1, %v2297_v0  ;;  %v811_v32 = vand.u32 7, %v787_v30 }
 0x183   :  { %2088 = vmatprep.subr.mxu1 %v2297_v0  ;;  %2085 = vmatprep.mubr.msk.f32.mxu0 %vm2298_vm1, %v2297_v0 }
 0x184   :  { %vm893_vm9 = vcmp.ge.s32.totalorder %v811_v32, %v2413_v37 }
 0x185   :  { %2081 = vmatmul.mubr.msk.f32.vlgmr.msra.gmra.mxu1 %vm164_vm2, %v629_v33 }
 0x186   :  { %2089 = vmatpush3.msra.mxu1 %v2358_v20  ;;  %2090 = vmatprep.mubr.msk.f32.mxu1 %vm2298_vm1, %v2297_v0 }
 0x187   :  { %2098 = vmatprep.subr.mxu1 %v2297_v0 }
 0x231   :  { %v235_v40 = vpop.f32.mrf.mxu1 }
 0x232   :  { %v899_v41 = vsel %vm891_vm3, %v235_v40, -1e+30 }
 0x233   :  { %v2052_v42 = vpop.f32.mrf.mxu1  ;;  %v908_v43 = vsel %vm907_vm4, %v899_v41, -inf }
 0x234   :  { %909 = vmax.xlane.f32.xlu0 %v908_v43 }
 0x235   :  { %v313_v44 = vpop.f32.mrf.mxu1 }
 0x236   :  { %v900_v45 = vsel %vm892_vm5, %v313_v44, -1e+30 }
 0x237   :  { %v2057_v46 = vpop.f32.mrf.mxu1  ;;  %v911_v47 = vsel %vm907_vm4, %v900_v45, -inf }
 0x238   :  { %912 = vmax.xlane.f32.xlu0 %v911_v47 }
 0x239   :  { %v2422_v50 = vpop.f32.mrf.mxu1 }
 0x23a   :  { %v901_v33 = vsel %vm893_vm9, %v2422_v50, -1e+30 }
 0x23b   :  { %v2062_v51 = vpop.f32.mrf.mxu1  ;;  %v914_v34 = vsel %vm907_vm4, %v901_v33, -inf }
 0x23d   :  { %v2424_v54 = vpop.f32.mrf.mxu1 }
 0x23f   :  { %v2067_v56 = vpop.f32.mrf.mxu1 }
 0x241   :  { %v546_v57 = vpop.f32.mrf.mxu1  ;;  %v624_v58 = vpop.f32.mrf.mxu0 }
 0x242   :  { %v903_v59 = vsel %vm895_vm6, %v546_v57, -1e+30  ;;  %v904_v60 = vsel %vm896_vm7, %v624_v58, -1e+30 }
 0x243   :  { %v2072_v61 = vpop.f32.mrf.mxu1  ;;  %v2077_v62 = vpop.f32.mrf.mxu0  ;;  %v920_v63 = vsel %vm907_vm4, %v903_v59, -inf  ;;  %v923_v1 = vsel %vm907_vm4, %v904_v60, -inf }
 0x244   :  { %921 = vmax.xlane.f32.xlu1 %v920_v63  ;;  %924 = vmax.xlane.f32.xlu0 %v923_v1  ;;  %v1143_v1 = vld [vmem:[#allocation7 + $0x8] sm:$0xff] }
 0x245   :  { %v702_v2 = vpop.f32.mrf.mxu1 }
 0x246   :  { %v905_v29 = vsel %vm897_vm8, %v702_v2, -1e+30  ;;  %v1142_v2 = vld [vmem:[#allocation7] sm:$0xff] }
 0x247   :  { %v2082_v3 = vpop.f32.mrf.mxu1  ;;  %v926_v31 = vsel %vm907_vm4, %v905_v29, -inf }
 0x255   :  { %708 = vrot.lane.b32.xlu1 %v2362_v21, %s2292_s19 }
 0x2bd   :  { %v910_v4 = vpop.xlane.xlu0 %909 }
 0x2be   :  { %v932_v5 = vsub.f32 %v899_v41, %v910_v4 }
 0x2c0   :  { %v940_v6 = vmul.f32 1.442695, %v932_v5  ;;  %v1299_v5 = vld [vmem:[#allocation7 + $0x18] sm:$0xff] }
 0x2c1   :  { %v913_v7 = vpop.xlane.xlu0 %912 }
 0x2c2   :  { %2172 = vpow2.f32 %v940_v6  ;;  %v933_v8 = vsub.f32 %v900_v45, %v913_v7  ;;  %v1298_v6 = vld [vmem:[#allocation7 + $0x10] sm:$0xff] }
 0x2c4   :  { %v942_v9 = vmul.f32 1.442695, %v933_v8 }
 0x2c6   :  { %2174 = vpow2.f32 %v942_v9 }
 0x2cd   :  { %v922_v10 = vpop.xlane.xlu1 %921  ;;  %v925_v11 = vpop.xlane.xlu0 %924 }
 0x2ce   :  { %v936_v12 = vsub.f32 %v903_v59, %v922_v10  ;;  %v937_v13 = vsub.f32 %v904_v60, %v925_v11 }
 0x2cf   :  { %v2173_v14 = vpop.eup %2172 }
 0x2d0   :  { %v950_v15 = vmul.f32 1.442695, %v937_v13  ;;  %v956_v16 = vsel %vm907_vm4, %v2173_v14, 0.0  ;;  %v948_v17 = vmul.f32 1.442695, %v936_v12  ;;  %v792_v13 = vadd.s32 56, %v2410_v35 }
 0x2d1   :  { %957 = vadd.xlane.f32.xlu1 %v956_v16  ;;  %v709_v18 = vpop.permute.xlu1 %708 }
 0x2d2   :  { %2084 = vmatpush3.xpose.msk.msra.mxu0 %vm164_vm2, %v709_v18  ;;  %2176 = vpow2.f32 %v950_v15  ;;  %v846_v16 = vand.u32 7, %v792_v13 }
 0x2d3   :  { %v2175_v19 = vpop.eup %2174  ;;  %2093 = vmatprep.subr.mxu0 %v2297_v0  ;;  %2178 = vpow2.f32 %v948_v17 }
 0x2d4   :  { %v959_v22 = vsel %vm907_vm4, %v2175_v19, 0.0  ;;  %vm898_vm11 = vcmp.ge.s32.totalorder %v846_v16, %v2413_v37 }
 0x2d5   :  { %960 = vadd.xlane.f32.xlu1 %v959_v22 }
 0x2df   :  { %v2177_v23 = vpop.eup %2176 }
 0x2e0   :  { %v971_v24 = vsel %vm907_vm4, %v2177_v23, 0.0  ;;  %v2179_v25 = vpop.eup %2178 }
 0x2e1   :  { %972 = vadd.xlane.f32.xlu0 %v971_v24  ;;  %v968_v26 = vsel %vm907_vm4, %v2179_v25, 0.0 }
 0x2e5   :  { %969 = vadd.xlane.f32.xlu0 %v968_v26 }
 0x2e6   :  { %1145 = vrot.lane.b32.xlu1 %v2358_v20, %s2299_s0 }
 0x2ea   :  { %1222 = vrot.lane.b32.xlu1 %v2426_v55, %s2299_s0 }
 0x2fb   :  { %706 = vrot.lane.b32.xlu0 %v2362_v21, %s2304_s10  ;;  %v788_v21 = vadd.s32 24, %v2410_v35 }
 0x2fd   :  { %v818_v36 = vand.u32 7, %v788_v21 }
 0x2ff   :  { %vm894_vm10 = vcmp.ge.s32.totalorder %v818_v36, %v2413_v37 }
 0x300   :  { %v2458_v38 = vsel %vm894_vm10, %v2424_v54, -1e+30 }
 0x301   :  { %v917_v39 = vsel %vm907_vm4, %v2458_v38, -inf }
 0x30e   :  { %927 = vmax.xlane.f32.xlu1 %v926_v31 }
 0x31a   :  { %915 = vmax.xlane.f32.xlu0 %v914_v34 }
 0x31f   :  { %1462 = vrot.lane.b32.xlu1 %v2358_v20, %s2303_s9 }
 0x343   :  { %918 = vmax.xlane.f32.xlu1 %v917_v39  ;;  %v1614_v39 = vld [vmem:[#allocation7 + $0x20] sm:$0xff] }
 0x35a   :  { %v958_v40 = vpop.xlane.xlu1 %957 }
 0x35b   :  { %2180 = vrcp.f32 %v958_v40 }
 0x35e   :  { %v961_v41 = vpop.xlane.xlu1 %960 }
 0x35f   :  { %2182 = vrcp.f32 %v961_v41 }
 0x362   :  { %v1146_v44 = vpop.permute.xlu1 %1145 }
 0x366   :  { %v1223_v53 = vpop.permute.xlu1 %1222 }
 0x368   :  { %v2181_v42 = vpop.eup %2180 }
 0x369   :  { %v988_v43 = vmul.f32 %v2181_v42, %v2173_v14 }
 0x36a   :  { %v973_v45 = vpop.xlane.xlu0 %972 }
 0x36b   :  { %2091 = vmatmul.mubr.msk.f32.vlgmr.msra.gmra.mxu1 %vm907_vm4, %v988_v43 }
 0x36c   :  { %v2183_v46 = vpop.eup %2182  ;;  %2099 = vmatpush3.msra.mxu1 %v1146_v44  ;;  %2100 = vmatprep.mubr.msk.f32.mxu1 %vm2298_vm1, %v2297_v0 }
 0x36d   :  { %v989_v47 = vmul.f32 %v2183_v46, %v2175_v19  ;;  %2108 = vmatprep.subr.mxu1 %v1299_v5 }
 0x36e   :  { %v970_v48 = vpop.xlane.xlu0 %969 }
 0x36f   :  { %2101 = vmatmul.mubr.msk.f32.vlgmr.msra.gmra.mxu1 %vm907_vm4, %v989_v47  ;;  %2184 = vrcp.f32 %v970_v48 }
 0x370   :  { %2186 = vrcp.f32 %v973_v45  ;;  %2109 = vmatpush3.msra.mxu1 %v1299_v5  ;;  %v1999_v5 = vld [vmem:[%s2527_s3] ss:$0 sm:$0xff] }
 0x371   :  { %2110 = vmatprep.subr.mxu1 %v1298_v6 }
 0x372   :  { %v707_v49 = vpop.permute.xlu0 %706  ;;  %2111 = vmatpush3.msra.mxu1 %v1298_v6 }
 0x373   :  { %2086 = vmatmul.mubr.msk.f32.vlgmr.msra.gmra.mxu0 %vm164_vm2, %v707_v49  ;;  %2122 = vmatprep.subr.mxu1 %v2297_v0 }
 0x374   :  { %2094 = vmatpush3.msra.mxu0 %v2426_v55  ;;  %2095 = vmatprep.mubr.msk.f32.mxu0 %vm2298_vm1, %v2297_v0 }
 0x375   :  { %2103 = vmatprep.subr.mxu0 %v2297_v0 }
 0x37c   :  { %v2185_v50 = vpop.eup %2184 }
 0x37d   :  { %v992_v51 = vmul.f32 %v2185_v50, %v2179_v25  ;;  %v2187_v52 = vpop.eup %2186 }
 0x37e   :  { %v993_v54 = vmul.f32 %v2187_v52, %v2177_v23 }
 0x37f   :  { %2096 = vmatmul.mubr.msk.f32.vlgmr.msra.gmra.mxu0 %vm907_vm4, %v992_v51 }
 0x380   :  { %2104 = vmatpush3.msra.mxu0 %v1223_v53  ;;  %2105 = vmatprep.mubr.msk.f32.mxu0 %vm2298_vm1, %v2297_v0 }
 0x381   :  { %2115 = vmatprep.subr.mxu0 %v1143_v1 }
 0x383   :  { %2106 = vmatmul.mubr.msk.f32.vlgmr.msra.gmra.mxu0 %vm907_vm4, %v993_v54 }
 0x384   :  { %2116 = vmatpush3.msra.mxu0 %v1143_v1 }
 0x385   :  { %2117 = vmatprep.subr.mxu0 %v1142_v2 }
 0x386   :  { %2118 = vmatpush3.msra.mxu0 %v1142_v2 }
 0x387   :  { %2127 = vmatprep.subr.mxu0 %v2297_v0 }
 0x397   :  { %v928_v56 = vpop.xlane.xlu1 %927 }
 0x398   :  { %v938_v57 = vsub.f32 %v905_v29, %v928_v56 }
 0x39a   :  { %v952_v60 = vmul.f32 1.442695, %v938_v57  ;;  %v1852_v57 = vld [vmem:[#allocation7 + $0x38] sm:$0xff] }
 0x39b   :  { %v1463_v7 = vpop.permute.xlu1 %1462 }
 0x3a3   :  { %v916_v58 = vpop.xlane.xlu0 %915 }
 0x3a4   :  { %v934_v59 = vsub.f32 %v901_v33, %v916_v58  ;;  %v1851_v58 = vld [vmem:[#allocation7 + $0x30] sm:$0xff] }
 0x3a6   :  { %v944_v61 = vmul.f32 1.442695, %v934_v59 }
 0x3a8   :  { %2188 = vpow2.f32 %v944_v61 }
 0x3a9   :  { %2190 = vpow2.f32 %v952_v60 }
 0x3b5   :  { %v2189_v62 = vpop.eup %2188 }
 0x3b6   :  { %v962_v63 = vsel %vm907_vm4, %v2189_v62, 0.0  ;;  %v2191_v3 = vpop.eup %2190 }
 0x3b7   :  { %963 = vadd.xlane.f32.xlu0 %v962_v63  ;;  %v974_v4 = vsel %vm907_vm4, %v2191_v3, 0.0 }
 0x3bb   :  { %975 = vadd.xlane.f32.xlu0 %v974_v4 }
 0x3cc   :  { %v919_v8 = vpop.xlane.xlu1 %918 }
 0x3cd   :  { %v935_v9 = vsub.f32 %v2458_v38, %v919_v8  ;;  %v1615_v38 = vld [vmem:[#allocation7 + $0x28] sm:$0xff] }
 0x3cf   :  { %v946_v10 = vmul.f32 1.442695, %v935_v9 }
 0x3d1   :  { %2192 = vpow2.f32 %v946_v10  ;;  %1538 = vrot.lane.b32.xlu0 %v2426_v55, %s2303_s9 }
 0x3de   :  { %v2193_v11 = vpop.eup %2192 }
 0x3df   :  { %v965_v12 = vsel %vm907_vm4, %v2193_v11, 0.0 }
 0x3e0   :  { %966 = vadd.xlane.f32.xlu1 %v965_v12 }
 0x3f1   :  { %1699 = vrot.lane.b32.xlu1 %v2358_v20, %s2304_s10 }
 0x42b   :  { %v1065_v14 = vpop.f32.mrf.mxu1 }
 0x42c   :  { %2119 = vmatprep.mubr.msk.f32.mxu0 %vm164_vm2, %v1065_v14 }
 0x42d   :  { %v2092_v15 = vpop.f32.mrf.mxu1 }
 0x42f   :  { %v1217_v17 = vpop.f32.mrf.mxu1 }
 0x430   :  { %2112 = vmatprep.mubr.msk.f32.mxu1 %vm164_vm2, %v1217_v17 }
 0x431   :  { %v2102_v18 = vpop.f32.mrf.mxu1 }
 0x433   :  { %v780_v19 = vpop.f32.mrf.mxu0 }
 0x434   :  { %v906_v22 = vsel %vm898_vm11, %v780_v19, -1e+30 }
 0x435   :  { %v2087_v23 = vpop.f32.mrf.mxu0  ;;  %v929_v24 = vsel %vm907_vm4, %v906_v22, -inf }
 0x436   :  { %930 = vmax.xlane.f32.xlu0 %v929_v24 }
 0x43f   :  { %v1138_v20 = vpop.f32.mrf.mxu0 }
 0x440   :  { %v964_v25 = vpop.xlane.xlu0 %963  ;;  %2120 = vmatmul.mubr.msk.f32.vlgmr.msra.gmra.mxu0 %vm164_vm2, %v1138_v20 }
 0x441   :  { %2194 = vrcp.f32 %v964_v25  ;;  %v2097_v35 = vpop.f32.mrf.mxu0  ;;  %2129 = vmatprep.mubr.msk.f32.mxu0 %vm2298_vm1, %v2297_v0 }
 0x443   :  { %v1294_v26 = vpop.f32.mrf.mxu0 }
 0x444   :  { %v976_v27 = vpop.xlane.xlu0 %975  ;;  %2113 = vmatmul.mubr.msk.f32.vlgmr.msra.gmra.mxu1 %vm164_vm2, %v1294_v26 }
 0x445   :  { %2196 = vrcp.f32 %v976_v27  ;;  %2123 = vmatpush3.msra.mxu1 %v1463_v7  ;;  %v2107_v37 = vpop.f32.mrf.mxu0  ;;  %2124 = vmatprep.mubr.msk.f32.mxu1 %vm2298_vm1, %v2297_v0 }
 0x446   :  { %2132 = vmatprep.subr.mxu1 %v1615_v38 }
 0x448   :  { %v1539_v28 = vpop.permute.xlu0 %1538 }
 0x449   :  { %2128 = vmatpush3.msra.mxu0 %v1539_v28 }
 0x44a   :  { %2139 = vmatprep.subr.mxu0 %v2297_v0 }
 0x44e   :  { %v2195_v29 = vpop.eup %2194 }
 0x44f   :  { %v990_v30 = vmul.f32 %v2195_v29, %v2189_v62 }
 0x451   :  { %2125 = vmatmul.mubr.msk.f32.vlgmr.msra.gmra.mxu1 %vm907_vm4, %v990_v30 }
 0x452   :  { %v2197_v31 = vpop.eup %2196  ;;  %2133 = vmatpush3.msra.mxu1 %v1615_v38 }
 0x453   :  { %v994_v32 = vmul.f32 %v2197_v31, %v2191_v3  ;;  %2134 = vmatprep.subr.mxu1 %v1614_v39 }
 0x454   :  { %2135 = vmatpush3.msra.mxu1 %v1614_v39 }
 0x455   :  { %2130 = vmatmul.mubr.msk.f32.vlgmr.msra.gmra.mxu0 %vm907_vm4, %v994_v32  ;;  %2144 = vmatprep.subr.mxu1 %v2297_v0 }
 0x456   :  { %2141 = vmatprep.mubr.msk.f32.mxu0 %vm2298_vm1, %v2297_v0 }
 0x469   :  { %v967_v33 = vpop.xlane.xlu1 %966 }
 0x46a   :  { %2198 = vrcp.f32 %v967_v33 }
 0x46d   :  { %v1700_v34 = vpop.permute.xlu1 %1699 }
 0x46e   :  { %2140 = vmatpush3.msra.mxu0 %v1700_v34 }
 0x46f   :  { %2149 = vmatprep.subr.mxu0 %v1852_v57 }
 0x477   :  { %v2199_v21 = vpop.eup %2198 }
 0x478   :  { %v991_v36 = vmul.f32 %v2199_v21, %v2193_v11 }
 0x47a   :  { %2142 = vmatmul.mubr.msk.f32.vlgmr.msra.gmra.mxu0 %vm907_vm4, %v991_v36 }
 0x47b   :  { %2150 = vmatpush3.msra.mxu0 %v1852_v57 }
 0x47c   :  { %2151 = vmatprep.subr.mxu0 %v1851_v58 }
 0x47d   :  { %2152 = vmatpush3.msra.mxu0 %v1851_v58 }
 0x4bf   :  { %v931_v40 = vpop.xlane.xlu0 %930 }
 0x4c0   :  { %v939_v41 = vsub.f32 %v906_v22, %v931_v40 }
 0x4c2   :  { %v954_v42 = vmul.f32 1.442695, %v939_v41 }
 0x4c4   :  { %2200 = vpow2.f32 %v954_v42 }
 0x4d1   :  { %v2201_v43 = vpop.eup %2200 }
 0x4d2   :  { %v977_v44 = vsel %vm907_vm4, %v2201_v43, 0.0 }
 0x4d3   :  { %978 = vadd.xlane.f32.xlu0 %v977_v44 }
 0x4e9   :  { %1775 = vrot.lane.b32.xlu0 %v2426_v55, %s2304_s10 }
 0x500   :  { %v2121_v45 = vpop.f32.mrf.mxu0 }
 0x502   :  { %v1453_v48 = vpop.f32.mrf.mxu0 }
 0x504   :  { %v2114_v46 = vpop.f32.mrf.mxu1 }
 0x505   :  { %v1459_v47 = vadd.f32 %v2121_v45, %v2114_v46 }
 0x506   :  { %v1372_v49 = vpop.f32.mrf.mxu1 }
 0x507   :  { %v1454_v50 = vadd.f32 %v1453_v48, %v1372_v49 }
 0x511   :  { %v1534_v51 = vpop.f32.mrf.mxu1 }
 0x512   :  { %2136 = vmatprep.mubr.msk.f32.mxu1 %vm164_vm2, %v1534_v51 }
 0x513   :  { %v2126_v52 = vpop.f32.mrf.mxu1 }
 0x515   :  { %v1610_v53 = vpop.f32.mrf.mxu0 }
 0x516   :  { %2137 = vmatmul.mubr.msk.f32.vlgmr.msra.gmra.mxu1 %vm164_vm2, %v1610_v53 }
 0x517   :  { %v2131_v54 = vpop.f32.mrf.mxu0  ;;  %2146 = vmatprep.mubr.msk.f32.mxu1 %vm2298_vm1, %v2297_v0 }
 0x53a   :  { %v1771_v56 = vpop.f32.mrf.mxu0 }
 0x53b   :  { %2153 = vmatprep.mubr.msk.f32.mxu0 %vm164_vm2, %v1771_v56 }
 0x53c   :  { %v2143_v55 = vpop.f32.mrf.mxu0 }
 0x55c   :  { %v979_v59 = vpop.xlane.xlu0 %978 }
 0x55d   :  { %2202 = vrcp.f32 %v979_v59 }
 0x560   :  { %v1776_v60 = vpop.permute.xlu0 %1775 }
 0x561   :  { %2145 = vmatpush3.msra.mxu1 %v1776_v60 }
 0x56a   :  { %v2203_v61 = vpop.eup %2202 }
 0x56b   :  { %v995_v62 = vmul.f32 %v2203_v61, %v2201_v43 }
 0x56d   :  { %2147 = vmatmul.mubr.msk.f32.vlgmr.msra.gmra.mxu1 %vm907_vm4, %v995_v62 }
 0x5d6   :  { %v2138_v63 = vpop.f32.mrf.mxu1 }
 0x5d7   :  { %v1698_v0 = vadd.f32 %v2138_v63, %v1459_v47 }
 0x5d8   :  { %v1688_v1 = vpop.f32.mrf.mxu1 }
 0x5d9   :  { %v1697_v6 = vadd.f32 %v1688_v1, %v1454_v50 }
 0x62d   :  { %v1847_v2 = vpop.f32.mrf.mxu1 }
 0x62e   :  { %2154 = vmatmul.mubr.msk.f32.vlgmr.msra.gmra.mxu0 %vm164_vm2, %v1847_v2 }
 0x62f   :  { %v2148_v3 = vpop.f32.mrf.mxu1 }
 0x6ee   :  { %v2155_v4 = vpop.f32.mrf.mxu0 }
 0x6ef   :  { %v1935_v7 = vadd.f32 %v2155_v4, %v1698_v0 }
 0x6f0   :  { %v1925_v8 = vpop.f32.mrf.mxu0 }
 0x6f1   :  { %v1944_v9 = vadd.f32 %v1999_v5, %v1935_v7  ;;  %v1934_v10 = vadd.f32 %v1925_v8, %v1697_v6 }
 0x6f3   :  { %1946 = vst.msk [vmem:[#allocation8 + $0x8] sm:$0xff] %vm77_vm0, %v1944_v9  ;;  %v1943_v11 = vadd.f32 %v1999_v5, %v1934_v10 }
 0x6f5   :  { %1945 = vst.msk [vmem:[#allocation8] sm:$0xff] %vm77_vm0, %v1943_v11 }
 0x6f6   :  { %2275 = shalt.err (!%p2272_p5)
}
 0x6f7   :  { %1958 = dma.vmem_to_hbm [thread:$0]  %s1953_s14, 256, %s2528_s4, [#allocation4], %s2294_s25, %s2294_s25, %s2295_s26  }
 0x6f8   :  { %2288 = dma.done.wait [#allocation4], 256  }
 0x6f9   :  { %2289 = vsyncadd [#allocation4], 4294967040 }
 0x6fa   :  { %1962 = vsyncpa [#allocation3], 1 }
 0x6fb   :  { %1963 = vsyncpa [#allocation6], 1 }
 0x6fc   :  { %1964 = vsyncpa [#allocation4], 1 }

</bundles_post_ra>
